<compile_context>
chip_gen: v7x
topology: tpu7x:2x2x1
jax: 0.10.0
libtpu: 0.0.40
codegen_flags: <defaults>
</compile_context>

<pallas_src>
import jax
import jax.numpy as jnp
from jax.experimental import pallas as pl
from jax.experimental.pallas import tpu as pltpu


# Module "config" (RollRev(step, axis))
STEP = [3, 5]
AXIS = [2, 3]


def _choose_row_tile(nc, row_bytes, target_bytes=2 * 1024 * 1024):
    """Pick a row-tile: ~target_bytes per block, multiple of 8 rows, <= nc."""
    tile = max(1, target_bytes // row_bytes)
    if tile >= nc:
        return nc                     # full extent (always legal block shape)
    tile = max(8, (tile // 8) * 8)    # keep (8,128) block-shape rule happy
    return min(tile, nc)


def _make_flat_roll_kernel(shift_h, shift_w, H, W, use_xlu_roll):
    """Kernel over a (rows, H*W) lane-dense tile applying the H and W rolls."""
    HW = H * W
    flat_h = (shift_h % H) * W        # H-roll as a flat lane roll
    w_s = shift_w % W                 # W-roll within each length-W row

    if use_xlu_roll:
        def _roll(v, s):              # XLU rotation: off the load/store slots
            return pltpu.roll(v, s, 1)
    else:
        def _roll(v, s):              # fallback for H*W not a lane multiple
            return jnp.roll(v, s, axis=1)

    def kernel(x_ref, o_ref):
        v = x_ref[...]
        if flat_h:
            # x[..., (h - shift_h) % H, w]  ==  flat roll by shift_h * W
            v = _roll(v, flat_h)
        if w_s:
            # Within-row roll: lanes with (i % W) >= w_s come from a flat roll
            # by w_s; lanes with (i % W) < w_s wrap inside the row, i.e. come
            # from a flat roll by (w_s - W) (taken mod H*W to stay positive).
            in_row = _roll(v, w_s)
            wrap = _roll(v, (w_s - W) % HW)
            lane_w = jax.lax.broadcasted_iota(jnp.int32, (v.shape[0], HW), 1) % W
            v = jnp.where(lane_w >= w_s, in_row, wrap)
        o_ref[...] = v

    return kernel


def roll_rev_forward(x, steps=STEP, axes=AXIS, *, in_place=False):
    """Pallas implementation of RollRev.forward (torch.roll semantics)."""
    if not isinstance(steps, (list, tuple)):
        steps = [steps]
        axes = [axes]
    steps = list(steps)
    axes = list(axes)
    assert len(steps) == len(axes)

    ndim = x.ndim
    assert ndim >= 2
    H, W = x.shape[-2], x.shape[-1]

    # Accumulate total shift per rolled axis (rolls commute / compose mod n).
    shift_h = 0
    shift_w = 0
    for s, a in zip(steps, axes):
        a = a % ndim
        # TODO(synk): rolls over leading (batch/channel) axes would need a
        # different tiling; this module instance only rolls the last two axes.
        assert a in (ndim - 2, ndim - 1), "only rolls over the last two axes supported"
        if a == ndim - 2:
            shift_h = (shift_h + s) % H
        else:
            shift_w = (shift_w + s) % W

    nc = 1
    for d in x.shape[:-2]:
        nc *= d
    hw = H * W

    # Lane-dense layout; row-major reshape is free layout plumbing.
    x_flat = x.reshape(nc, hw)

    row_bytes = hw * x.dtype.itemsize
    tile_b = _choose_row_tile(nc, row_bytes)
    grid = (pl.cdiv(nc, tile_b),)

    kernel = _make_flat_roll_kernel(
        shift_h, shift_w, H, W, use_xlu_roll=(hw % 128 == 0))

    # Pure-bandwidth op: one full read + one full write of the tensor.
    bytes_accessed = 2 * x.size * x.dtype.itemsize

    out_flat = pl.pallas_call(
        kernel,
        out_shape=jax.ShapeDtypeStruct((nc, hw), x.dtype),
        grid=grid,
        in_specs=[pl.BlockSpec((tile_b, hw), lambda i: (i, 0))],
        out_specs=pl.BlockSpec((tile_b, hw), lambda i: (i, 0)),
        compiler_params=pltpu.CompilerParams(
            dimension_semantics=("parallel",)),
        cost_estimate=pl.CostEstimate(
            flops=0, transcendentals=0, bytes_accessed=bytes_accessed),
        # Each block is fully read into VMEM before the same block index is
        # written back, so in-place aliasing is safe when the caller can
        # donate the input buffer.
        input_output_aliases=({0: 0} if in_place else {}),
    )(x_flat)

    return out_flat.reshape(x.shape)


def roll_rev_reverse(x, steps=STEP, axes=AXIS, *, in_place=False):
    """Pallas implementation of RollRev.reverse (negated shifts)."""
    if not isinstance(steps, (list, tuple)):
        steps = [steps]
        axes = [axes]
    return roll_rev_forward(x, [-s for s in steps], list(axes), in_place=in_place)


class RollRev:
    """Parameter-free reversible roll, mirroring the PyTorch module."""

    def __init__(self, step, axis):
        if not isinstance(step, list):
            assert not isinstance(axis, list)
            step = [step]
            axis = [axis]
        assert len(step) == len(axis)
        self.step = step
        self.axis = axis

    def forward(self, x):
        return roll_rev_forward(x, self.step, self.axis)

    def reverse(self, x):
        return roll_rev_reverse(x, self.step, self.axis)


if __name__ == "__main__":
    key = jax.random.PRNGKey(0)
    x = jax.random.normal(key, (2, 4, 16, 16), dtype=jnp.float32)  # NCHW

    mod = RollRev(STEP, AXIS)

    # Forward
    y = jax.block_until_ready(mod.forward(x))

    # Reference (jnp.roll has identical semantics to torch.roll)
    y_ref = x
    for s, a in zip(STEP, AXIS):
        y_ref = jnp.roll(y_ref, s, axis=a)
    assert y.shape == x.shape and y.dtype == x.dtype
    assert jnp.array_equal(y, y_ref), "forward mismatch vs reference"

    # Reverse round-trip check
    x_back = jax.block_until_ready(mod.reverse(y))
    assert jnp.array_equal(x_back, x), "reverse(forward(x)) != x"

    print("KERNEL_OK")
</pallas_src>

<mosaic_0001>
module attributes {stable_mosaic.version = 11 : i64} {
  func.func @kernel(%arg0: i32, %arg1: memref<8x256xf32, #tpu.memory_space<vmem>>, %arg2: memref<8x256xf32, #tpu.memory_space<vmem>>) attributes {dimension_semantics = [#tpu.dimension_semantics<parallel>], iteration_bounds = array<i64: 1>, scalar_prefetch = 0 : i64, scratch_operands = 0 : i64, tpu.core_type = #tpu.core_type<tc>, window_params = [{transform_indices = @transform_0, window_bounds = array<i64: 8, 256>}, {transform_indices = @transform_1, window_bounds = array<i64: 8, 256>}]} {
    %c0 = arith.constant 0 : index
    %c0_0 = arith.constant 0 : index
    %0 = vector.load %arg1[%c0, %c0_0] : memref<8x256xf32, #tpu.memory_space<vmem>>, vector<8x256xf32>
    %c48_i32 = arith.constant 48 : i32
    %1 = tpu.dynamic_rotate %0 by %c48_i32 dim 1 : vector<8x256xf32>, i32 -> vector<8x256xf32>
    %c5_i32 = arith.constant 5 : i32
    %2 = tpu.dynamic_rotate %1 by %c5_i32 dim 1 : vector<8x256xf32>, i32 -> vector<8x256xf32>
    %c245_i32 = arith.constant 245 : i32
    %3 = tpu.dynamic_rotate %1 by %c245_i32 dim 1 : vector<8x256xf32>, i32 -> vector<8x256xf32>
    %4 = tpu.iota {dimensions = array<i32: 1>} : vector<8x256xi32>
    %c16_i32 = arith.constant 16 : i32
    %c0_i32 = arith.constant 0 : i32
    %5 = arith.cmpi eq, %c16_i32, %c0_i32 : i32
    %c1_i32 = arith.constant 1 : i32
    %6 = arith.select %5, %c1_i32, %c16_i32 : i32
    %7 = vector.broadcast %6 : i32 to vector<8x256xi32>
    %8 = arith.remsi %4, %7 : vector<8x256xi32>
    %c0_i32_1 = arith.constant 0 : i32
    %9 = vector.broadcast %c0_i32_1 : i32 to vector<8x256xi32>
    %10 = arith.cmpi ne, %8, %9 : vector<8x256xi32>
    %c0_i32_2 = arith.constant 0 : i32
    %11 = vector.broadcast %c0_i32_2 : i32 to vector<8x256xi32>
    %12 = arith.cmpi slt, %8, %11 : vector<8x256xi32>
    %c0_i32_3 = arith.constant 0 : i32
    %13 = arith.cmpi slt, %6, %c0_i32_3 : i32
    %14 = vector.broadcast %13 : i1 to vector<8x256xi1>
    %15 = vector.broadcast %14 : vector<8x256xi1> to vector<8x256xi1>
    %16 = arith.xori %12, %15 : vector<8x256xi1>
    %17 = arith.andi %16, %10 : vector<8x256xi1>
    %18 = vector.broadcast %6 : i32 to vector<8x256xi32>
    %19 = arith.addi %8, %18 : vector<8x256xi32>
    %20 = arith.select %17, %19, %8 : vector<8x256xi1>, vector<8x256xi32>
    %c5_i32_4 = arith.constant 5 : i32
    %21 = vector.broadcast %c5_i32_4 : i32 to vector<8x256xi32>
    %22 = arith.cmpi sge, %20, %21 : vector<8x256xi32>
    %23 = arith.select %22, %2, %3 : vector<8x256xi1>, vector<8x256xf32>
    %c0_5 = arith.constant 0 : index
    %c0_6 = arith.constant 0 : index
    %24 = vector.load %arg2[%c0_5, %c0_6] : memref<8x256xf32, #tpu.memory_space<vmem>>, vector<8x256xf32>
    tpu.vector_store %arg2[%c0_5, %c0_6], %23 {strides = array<i32>} : memref<8x256xf32, #tpu.memory_space<vmem>>, vector<8x256xf32>,
    return
  }
  func.func @transform_0(%arg0: i32) -> (i32, i32) {
    %c0_i32 = arith.constant 0 : i32
    %c0_i32_0 = arith.constant 0 : i32
    return %arg0, %c0_i32 : i32, i32
  }
  func.func @transform_1(%arg0: i32) -> (i32, i32) {
    %c0_i32 = arith.constant 0 : i32
    %c0_i32_0 = arith.constant 0 : i32
    return %arg0, %c0_i32 : i32, i32
  }
}

</mosaic_0001>

<bundles_post_ra>
// kernel: tpu_custom_call.1
= control target key start
LH: loop header
LB: loop body
LE: loop exit
PB: predicated region body
PF: predicated region fallthrough
CT: control target
= control target key end

     0   :  { %6 = vsyncpa [#allocation3], 0  ;;  %s184_s0 = inlined_call_operand.hbm [shape: f32[8,256], index: 0, kind: input, shape index: {}]   ;;  %s185_s1 = inlined_call_operand.hbm [shape: f32[8,256], index: 1, kind: output, shape index: {}]  }
   0x1   :  { %7 = vsyncpa [#allocation4], 0  ;;  %s145_s6 = smov [#allocation2]   ;;  %s97_s10 = scalar_lea.hbm %s184_s0, 256 }
   0x2   :  { %s14_s7 = sshll.u32 %s145_s6, 4  ;;  %p98_p0 = scmp.ne.s32.totalorder %s184_s0, %s97_s10  ;;  %s15_s7 = int_to_ptr.vmem [resolvable:$true] %s14_s7 }
   0x3   :  { %p101_p1 = scmp.lt.u32.totalorder %s97_s10, %s184_s0 }
   0x5   :  { %p103_p2 = pnand %p101_p1, %p98_p0 }
   0x7   :  { %106 = shalt.err (!%p103_p2)
}
   0x8   :  { %s107_s15 = scalar_lea.vmem %s15_s7, 256  ;;  %p112_p4 = scmp.lt.s32.totalorder %s15_s7, %s15_s7 }
   0x9   :  { %p108_p3 = scmp.ne.s32.totalorder %s15_s7, %s107_s15  ;;  %p113_p5 = scmp.lt.s32.totalorder %s107_s15, %s107_s15 }
   0xb   :  { %p114_p6 = por %p113_p5, %p112_p4 }
   0xd   :  { %p115_p7 = pnand %p114_p6, %p108_p3 }
   0xf   :  { %118 = shalt.err (!%p115_p7)
}
  0x10   :  { %17 = dma.hbm_to_vmem [thread:$0]  %s184_s0, 256, %s15_s7, [#allocation3]  }
  0x11   :  { %141 = dma.done.wait [#allocation3], 256  }
  0x12   :  { %142 = vsyncadd [#allocation3], 4294967040  ;;  %v21_v0 = vld [vmem:[#allocation2] sm:$0xff]  ;;  %s146_s18 = smov 48   ;;  %v22_v1 = vld [vmem:[#allocation2 + $0x8] sm:$0xff]  ;;  %v27_v2 = vlaneseq  ;;  %s147_s19 = smov 117  }
  0x13   :  { %23 = vrot.lane.b32.xlu0 %v21_v0, %s146_s18  ;;  %s148_s20 = smov 5   ;;  %s149_s0 = smov [#allocation5]  }
  0x14   :  { %v28_v3 = vand.u32 127, %v27_v2  ;;  %s83_s21 = sshll.u32 %s149_s0, 4  ;;  %s84_s21 = int_to_ptr.vmem [resolvable:$true] %s83_s21 }
  0x15   :  { %s119_s22 = scalar_lea.vmem %s84_s21, 256  ;;  %p124_p9 = scmp.lt.s32.totalorder %s84_s21, %s84_s21 }
  0x16   :  { %vm29_vm0 = vcmp.lt.s32.totalorder %v28_v3, 48  ;;  %v46_v8 = vadd.s32 128, %v28_v3  ;;  %v51_v10 = vand.u32 15, %v28_v3  ;;  %vm36_vm1 = vcmp.lt.s32.totalorder %v28_v3, 5  ;;  %p120_p8 = scmp.ne.s32.totalorder %s84_s21, %s119_s22  ;;  %p125_p10 = scmp.lt.s32.totalorder %s119_s22, %s119_s22 }
  0x17   :  { %25 = vrot.lane.b32.xlu0 %v22_v1, %s146_s18  ;;  %vm43_vm2 = vcmp.lt.s32.totalorder %v28_v3, 117 }
  0x18   :  { %v58_v11 = vand.u32 15, %v46_v8  ;;  %vm71_vm3 = vcmp.ge.s32.totalorder %v51_v10, 5  ;;  %p126_p11 = por %p125_p10, %p124_p9 }
  0x1a   :  { %vm72_vm4 = vcmp.ge.s32.totalorder %v58_v11, 5  ;;  %p127_p12 = pnand %p126_p11, %p120_p8 }
  0x85   :  { %v24_v4 = vpop.permute.xlu0 %23 }
  0x89   :  { %v26_v5 = vpop.permute.xlu0 %25 }
  0x8a   :  { %v31_v6 = vsel %vm29_vm0, %v26_v5, %v24_v4  ;;  %v30_v7 = vsel %vm29_vm0, %v24_v4, %v26_v5 }
  0x8b   :  { %39 = vrot.lane.b32.xlu0 %v31_v6, %s147_s19  ;;  %32 = vrot.lane.b32.xlu1 %v31_v6, %s148_s20 }
  0x8f   :  { %34 = vrot.lane.b32.xlu1 %v30_v7, %s148_s20 }
  0x93   :  { %41 = vrot.lane.b32.xlu1 %v30_v7, %s147_s19 }
  0xfd   :  { %v33_v9 = vpop.permute.xlu1 %32  ;;  %v40_v13 = vpop.permute.xlu0 %39 }
 0x101   :  { %v35_v12 = vpop.permute.xlu1 %34 }
 0x102   :  { %v37_v15 = vsel %vm36_vm1, %v33_v9, %v35_v12  ;;  %v38_v16 = vsel %vm36_vm1, %v35_v12, %v33_v9 }
 0x105   :  { %v42_v14 = vpop.permute.xlu1 %41 }
 0x106   :  { %v44_v17 = vsel %vm43_vm2, %v40_v13, %v42_v14  ;;  %v45_v18 = vsel %vm43_vm2, %v42_v14, %v40_v13 }
 0x107   :  { %v73_v19 = vsel %vm71_vm3, %v38_v16, %v44_v17  ;;  %v74_v20 = vsel %vm72_vm4, %v37_v15, %v45_v18 }
 0x108   :  { %75 = vst [vmem:[#allocation5] sm:$0xff] %v73_v19  ;;  %76 = vst [vmem:[#allocation5 + $0x8] sm:$0xff] %v74_v20 }
 0x109   :  { %130 = shalt.err (!%p127_p12)
}
 0x10a   :  { %s131_s25 = scalar_lea.hbm %s185_s1, 256 }
 0x10b   :  { %p132_p13 = scmp.ne.s32.totalorder %s185_s1, %s131_s25  ;;  %p135_p0 = scmp.lt.u32.totalorder %s131_s25, %s185_s1 }
 0x10d   :  { %p137_p1 = pnand %p135_p0, %p132_p13 }
 0x10f   :  { %140 = shalt.err (!%p137_p1)
}
 0x110   :  { %86 = dma.vmem_to_hbm [thread:$0]  %s84_s21, 256, %s185_s1, [#allocation4]  }
 0x111   :  { %143 = dma.done.wait [#allocation4], 256  }
 0x112   :  { %144 = vsyncadd [#allocation4], 4294967040 }
 0x113   :  { %90 = vsyncpa [#allocation3], 1 }
 0x114   :  { %91 = vsyncpa [#allocation4], 1 }

</bundles_post_ra>
